<compile_context>
chip_gen: v5e
topology: v5e:2x2
jax: 0.10.0
libtpu: 0.0.40
codegen_flags: <defaults>
</compile_context>

<pallas_src>
import functools

import jax
import jax.numpy as jnp
import numpy as np
from jax.experimental import pallas as pl
from jax.experimental.pallas import tpu as pltpu

LN_EPS = 1e-5
LANE = 128
F32 = jnp.float32
BF16 = jnp.bfloat16


def _round_up(n, m):
    return ((n + m - 1) // m) * m


def _arr_bytes(a):
    return int(a.size) * a.dtype.itemsize


def _vmem_limit(in_bytes, out_bytes, temp_bytes):
    # double-buffered in/out blocks + in-kernel temporaries, clamped with headroom
    # below v7x's 64 MiB/TC physical VMEM (slack on v5e/v6e's 128 MiB).
    total = 2 * (in_bytes + out_bytes) + temp_bytes
    return int(min(max(total, 8 * 2 ** 20), 56 * 2 ** 20))


def _const_spec(shape):
    nd = len(shape)
    return pl.BlockSpec(shape, lambda *_: (0,) * nd)


# ----------------------------- in-kernel helpers -----------------------------

def _lane_mask(c_real, c_pad):
    if c_pad == c_real:
        return None
    return jax.lax.broadcasted_iota(jnp.int32, (1, c_pad), 1) < c_real


def _layernorm_padded(x, g, b, c_real, mask):
    """LayerNorm over the last dim; only the first c_real lanes hold real data.

    Padded lanes of x must be zero; g/b are zero on padded lanes, so padded lanes of
    the result stay exactly zero.  Two-pass (x-mu)^2 variance for better precision."""
    inv_c = 1.0 / c_real
    mu = jnp.sum(x, axis=-1, keepdims=True) * inv_c
    d = x - mu
    if mask is not None:
        d = jnp.where(mask, d, 0.0)          # zero the padded lanes of (x - mu)
    var = jnp.sum(d * d, axis=-1, keepdims=True) * inv_c
    return d * jax.lax.rsqrt(var + LN_EPS) * g + b


def _gelu_exact(x):
    # PyTorch nn.GELU default (approximate='none'): 0.5*x*(1+erf(x/sqrt(2)))
    # TODO(synk): tanh-approx GELU would move the transcendental to the EUP slot
    # (biggest relative win on v5e) but changes numerics vs. the PyTorch reference.
    return 0.5 * x * (1.0 + jax.lax.erf(x * 0.7071067811865476))


# ---------------------- kernel A: per-batch K/V production --------------------

def _kv_kernel(x_ref, g1_ref, b1_ref, wkv_ref, k_ref, v_ref, *, C_real):
    """sr_ratio == 1: K/V = LN1(x) @ Wkv for one batch."""
    Cp = k_ref.shape[-1]
    mask = _lane_mask(C_real, Cp)
    x = x_ref[0]                                                   # (N, Cp)
    xn1 = _layernorm_padded(x, g1_ref[...], b1_ref[...], C_real, mask)
    kv = jnp.dot(xn1.astype(BF16), wkv_ref[...], preferred_element_type=F32)
    k_ref[0] = kv[:, :Cp].astype(BF16)
    v_ref[0] = kv[:, Cp:].astype(BF16)


def _kv_sr_kernel(xp_ref, g1_ref, b1_ref, wsr_ref, bsrc_ref, gsr_ref, bsrn_ref,
                  wkv_ref, k_ref, v_ref, *, sr2, C_real):
    """sr_ratio > 1: LN1 per chunk -> fused strided-conv matmul -> LN -> Wkv."""
    Cp = k_ref.shape[-1]
    Nk = xp_ref.shape[1]
    mask = _lane_mask(C_real, Cp)
    xp = xp_ref[0]                                                 # (Nk, sr2*Cp)

    # hoist the (1,Cp)->(Nk,Cp) broadcasts of the LN1 affine params out of the loop
    g1 = jnp.broadcast_to(g1_ref[...], (Nk, Cp))
    b1 = jnp.broadcast_to(b1_ref[...], (Nk, Cp))

    # LN1 each C-chunk (lane slices are Cp-aligned -> full-vreg), then ONE fused
    # (Nk, sr2*Cp) @ (sr2*Cp, Cp) MXU pass for the stride-sr conv.
    chunks = [_layernorm_padded(xp[:, i * Cp:(i + 1) * Cp], g1, b1, C_real, mask)
              for i in range(sr2)]
    xcat = chunks[0] if sr2 == 1 else jnp.concatenate(chunks, axis=-1)
    x_ = jnp.dot(xcat.astype(BF16), wsr_ref[...],
                 preferred_element_type=F32) + bsrc_ref[...]
    x_ = _layernorm_padded(x_, gsr_ref[...], bsrn_ref[...], C_real, mask)

    kv = jnp.dot(x_.astype(BF16), wkv_ref[...], preferred_element_type=F32)
    k_ref[0] = kv[:, :Cp].astype(BF16)
    v_ref[0] = kv[:, Cp:].astype(BF16)


# ------------------- kernel B: row-tiled fused transformer block ---------------

def _block_row_kernel(x_ref, k_ref, v_ref,
                      wq_ref, wproj_ref, bproj_ref,
                      g1_ref, b1_ref, g2_ref, b2_ref,
                      w1_ref, b1m_ref, w2_ref, b2m_ref,
                      o_ref, *, num_heads, scale, C_real):
    Cp = x_ref.shape[-1]
    hd = C_real // num_heads
    mask = _lane_mask(C_real, Cp)

    x = x_ref[0]                                                   # (TM, Cp) f32
    TM = x.shape[0]

    # ---- norm1 + q projection (softmax scale folded into the single bf16 cast) ---
    xn1 = _layernorm_padded(x, g1_ref[...], b1_ref[...], C_real, mask)
    q = jnp.dot(xn1.astype(BF16), wq_ref[...], preferred_element_type=F32)
    q_bf = (q * scale).astype(BF16)                                # (TM, Cp)

    k_bf = k_ref[0]                                                # (Nk, Cp) bf16
    v_bf = v_ref[0]                                                # (Nk, Cp) bf16

    # ---- multi-head attention; heads concatenated along lanes, one full-K proj ----
    heads = []
    for h in range(num_heads):
        qh = q_bf[:, h * hd:(h + 1) * hd]
        kh = k_bf[:, h * hd:(h + 1) * hd]
        vh = v_bf[:, h * hd:(h + 1) * hd]
        s = jax.lax.dot_general(qh, kh, (((1,), (1,)), ((), ())),
                                preferred_element_type=F32)        # (TM, Nk)
        s = s - jnp.max(s, axis=-1, keepdims=True)
        p = jnp.exp(s)
        p = p * pl.reciprocal(jnp.sum(p, axis=-1, keepdims=True), approx=True)
        heads.append(jnp.dot(p.astype(BF16), vh, preferred_element_type=F32))
    if Cp > C_real:
        heads.append(jnp.zeros((TM, Cp - C_real), F32))            # keep K = Cp dense
    cat = heads[0] if len(heads) == 1 else jnp.concatenate(heads, axis=-1)
    attn_out = jnp.dot(cat.astype(BF16), wproj_ref[...],
                       preferred_element_type=F32) + bproj_ref[...]

    # ---- residual 1, norm2, MLP, residual 2 ---------------------------------------
    x1 = x + attn_out
    xn2 = _layernorm_padded(x1, g2_ref[...], b2_ref[...], C_real, mask)
    h1 = jnp.dot(xn2.astype(BF16), w1_ref[...],
                 preferred_element_type=F32) + b1m_ref[...]
    h1 = _gelu_exact(h1)
    mlp = jnp.dot(h1.astype(BF16), w2_ref[...],
                  preferred_element_type=F32) + b2m_ref[...]
    o_ref[0] = x1 + mlp


# ----------------------------------- wrapper -----------------------------------

def pvt_block_forward(x, params, H, W, *, num_heads, sr_ratio, row_tile=None):
    B, N, C = x.shape
    assert H * W == N, "N must equal H*W"
    assert C % num_heads == 0, "C must be divisible by num_heads"
    if sr_ratio > 1:
        assert H % sr_ratio == 0 and W % sr_ratio == 0

    scale = (C // num_heads) ** -0.5
    hidden = params["w1"].shape[1]
    Cp = _round_up(C, LANE)
    Hdp = _round_up(hidden, LANE)

    # ---- row tiling over the token dimension -------------------------------------
    if row_tile is None:
        N_p = _round_up(N, 8)
        TM = 8
        for t in range(8, min(N_p, 256) + 1, 8):
            if N_p % t == 0:
                TM = t
    else:
        assert row_tile % 8 == 0 and row_tile > 0
        TM = row_tile
        N_p = _round_up(N, TM)
    n_row_tiles = N_p // TM

    def pad2(w, rows, cols, dtype):
        return (jnp.zeros((rows, cols), F32)
                .at[:w.shape[0], :w.shape[1]].set(w).astype(dtype))

    def pad_vec(v, cols):
        return jnp.zeros((1, cols), F32).at[:, :v.shape[1]].set(v)

    # lane- (and token-) padded activations; padded entries are exactly zero
    x_pad = jnp.pad(x, ((0, 0), (0, N_p - N), (0, Cp - C)))        # (B, N_p, Cp)

    w_q = pad2(params["w_q"], Cp, Cp, BF16)
    w_kv = (jnp.zeros((Cp, 2 * Cp), F32)
            .at[:C, :C].set(params["w_kv"][:, :C])
            .at[:C, Cp:Cp + C].set(params["w_kv"][:, C:])
            .astype(BF16))
    w_proj = pad2(params["w_proj"], Cp, Cp, BF16)
    w1 = pad2(params["w1"], Cp, Hdp, BF16)
    w2 = pad2(params["w2"], Hdp, Cp, BF16)

    b_proj = pad_vec(params["b_proj"], Cp)
    b1m = pad_vec(params["b1m"], Hdp)
    b2m = pad_vec(params["b2m"], Cp)
    g1 = pad_vec(params["g1"], Cp)
    b1 = pad_vec(params["b1"], Cp)
    g2 = pad_vec(params["g2"], Cp)
    b2 = pad_vec(params["b2"], Cp)

    # ---- kernel A: per-batch K/V (grid over batch, parallel) ---------------------
    if sr_ratio > 1:
        sr = sr_ratio
        Hk, Wk = H // sr, W // sr
        Nk = Hk * Wk
        sr2 = sr * sr
        P = sr2 * Cp
        # patchify the RAW (channel-padded, token-unpadded) x; LN1 happens in-kernel
        x_img = x_pad[:, :N, :]
        xp = (x_img.reshape(B, Hk, sr, Wk, sr, Cp)
                   .transpose(0, 1, 3, 2, 4, 5)
                   .reshape(B, Nk, P))
        # Conv weight (C_out, C_in, sr, sr) -> ((di, dj, c_in), c_out), lane-padded
        w_sr_pad = jnp.zeros((Cp, Cp, sr, sr), F32).at[:C, :C].set(params["w_sr"])
        w_sr_flat = w_sr_pad.transpose(2, 3, 1, 0).reshape(P, Cp).astype(BF16)
        b_sr_conv = pad_vec(params["b_sr_conv"], Cp)
        g_sr = pad_vec(params["g_sr"], Cp)
        b_sr = pad_vec(params["b_sr"], Cp)

        kv_args = [xp, g1, b1, w_sr_flat, b_sr_conv, g_sr, b_sr, w_kv]
        kv_in_specs = ([pl.BlockSpec((1, Nk, P), lambda b: (b, 0, 0))]
                       + [_const_spec(a.shape) for a in kv_args[1:]])
        kv_kernel = functools.partial(_kv_sr_kernel, sr2=sr2, C_real=C)
        kv_src_block = Nk * P * 4
        kv_tmp = 6 * Nk * max(P, 2 * Cp) * 4
    else:
        Nk = N
        kv_args = [x_pad[:, :N, :], g1, b1, w_kv]
        kv_in_specs = ([pl.BlockSpec((1, N, Cp), lambda b: (b, 0, 0))]
                       + [_const_spec(a.shape) for a in kv_args[1:]])
        kv_kernel = functools.partial(_kv_kernel, C_real=C)
        kv_src_block = N * Cp * 4
        kv_tmp = 6 * Nk * 2 * Cp * 4

    kv_out_spec = pl.BlockSpec((1, Nk, Cp), lambda b: (b, 0, 0))
    kv_vmem = _vmem_limit(
        in_bytes=kv_src_block + sum(_arr_bytes(a) for a in kv_args[1:]),
        out_bytes=2 * Nk * Cp * 2,
        temp_bytes=kv_tmp)

    k_arr, v_arr = pl.pallas_call(
        kv_kernel,
        out_shape=(jax.ShapeDtypeStruct((B, Nk, Cp), BF16),
                   jax.ShapeDtypeStruct((B, Nk, Cp), BF16)),
        grid=(B,),
        in_specs=kv_in_specs,
        out_specs=(kv_out_spec, kv_out_spec),
        compiler_params=pltpu.CompilerParams(
            dimension_semantics=("parallel",),
            vmem_limit_bytes=kv_vmem),
    )(*kv_args)

    # ---- kernel B: row-tiled fused block (grid over batch x row tiles, parallel) ---
    blk_args = [x_pad, k_arr, v_arr, w_q, w_proj, b_proj,
                g1, b1, g2, b2, w1, b1m, w2, b2m]
    row_spec = pl.BlockSpec((1, TM, Cp), lambda b, r: (b, r, 0))
    kv_spec = pl.BlockSpec((1, Nk, Cp), lambda b, r: (b, 0, 0))   # same block across r
    blk_in_specs = [row_spec, kv_spec, kv_spec] + [_const_spec(a.shape)
                                                   for a in blk_args[3:]]

    blk_vmem = _vmem_limit(
        in_bytes=TM * Cp * 4 + 2 * Nk * Cp * 2
                 + sum(_arr_bytes(a) for a in blk_args[3:]),
        out_bytes=TM * Cp * 4,
        temp_bytes=8 * TM * max(Cp, Hdp, _round_up(Nk, LANE)) * 4)

    out = pl.pallas_call(
        functools.partial(_block_row_kernel,
                          num_heads=num_heads, scale=scale, C_real=C),
        out_shape=jax.ShapeDtypeStruct((B, N_p, Cp), F32),
        grid=(B, n_row_tiles),
        in_specs=blk_in_specs,
        out_specs=row_spec,
        compiler_params=pltpu.CompilerParams(
            dimension_semantics=("parallel", "parallel"),
            vmem_limit_bytes=blk_vmem),
    )(*blk_args)

    # drop token/lane padding
    return out[:, :N, :C]


# ------------------------- deterministic parameter init -----------------------

def init_params(key, C, num_heads, mlp_ratio, sr_ratio):
    hidden = int(C * mlp_ratio)
    ks = jax.random.split(key, 16)
    rnd = lambda k, shape, s: jax.random.normal(k, shape, jnp.float32) * s
    return dict(
        g1=1.0 + rnd(ks[0], (1, C), 0.1), b1=rnd(ks[1], (1, C), 0.1),
        w_q=rnd(ks[2], (C, C), 0.1), w_kv=rnd(ks[3], (C, 2 * C), 0.1),
        w_sr=rnd(ks[4], (C, C, sr_ratio, sr_ratio), 0.1),          # (C_out, C_in, kH, kW)
        b_sr_conv=rnd(ks[5], (1, C), 0.1),
        g_sr=1.0 + rnd(ks[6], (1, C), 0.1), b_sr=rnd(ks[7], (1, C), 0.1),
        w_proj=rnd(ks[8], (C, C), 0.1), b_proj=rnd(ks[9], (1, C), 0.1),
        g2=1.0 + rnd(ks[10], (1, C), 0.1), b2=rnd(ks[11], (1, C), 0.1),
        w1=rnd(ks[12], (C, hidden), 0.1), b1m=rnd(ks[13], (1, hidden), 0.1),
        w2=rnd(ks[14], (hidden, C), 0.1), b2m=rnd(ks[15], (1, C), 0.1),
    )


# ------------------------------ pure-JAX reference -----------------------------

def block_reference(x, params, H, W, *, num_heads, sr_ratio):
    B, N, C = x.shape
    hd = C // num_heads
    scale = hd ** -0.5

    def ln(z, g, b):
        mu = z.mean(-1, keepdims=True)
        var = ((z - mu) ** 2).mean(-1, keepdims=True)
        return (z - mu) / jnp.sqrt(var + LN_EPS) * g + b

    xn1 = ln(x, params["g1"], params["b1"])
    q = xn1 @ params["w_q"]
    if sr_ratio > 1:
        x_img = jnp.transpose(xn1, (0, 2, 1)).reshape(B, C, H, W)
        x_c = jax.lax.conv_general_dilated(
            x_img, params["w_sr"], window_strides=(sr_ratio, sr_ratio),
            padding="VALID", dimension_numbers=("NCHW", "OIHW", "NCHW"))
        x_c = x_c + params["b_sr_conv"].reshape(1, C, 1, 1)
        x_ = x_c.reshape(B, C, -1).transpose(0, 2, 1)
        x_ = ln(x_, params["g_sr"], params["b_sr"])
    else:
        x_ = xn1
    kv = x_ @ params["w_kv"]
    k, v = kv[..., :C], kv[..., C:]
    Nk = k.shape[1]
    qh = q.reshape(B, N, num_heads, hd).transpose(0, 2, 1, 3)
    kh = k.reshape(B, Nk, num_heads, hd).transpose(0, 2, 1, 3)
    vh = v.reshape(B, Nk, num_heads, hd).transpose(0, 2, 1, 3)
    attn = jnp.einsum('bhqd,bhkd->bhqk', qh, kh) * scale
    attn = jax.nn.softmax(attn, axis=-1)
    o = jnp.einsum('bhqk,bhkd->bhqd', attn, vh).transpose(0, 2, 1, 3).reshape(B, N, C)
    o = o @ params["w_proj"] + params["b_proj"]
    x1 = x + o
    xn2 = ln(x1, params["g2"], params["b2"])
    h1 = jax.nn.gelu(xn2 @ params["w1"] + params["b1m"], approximate=False)
    mlp = h1 @ params["w2"] + params["b2m"]
    return x1 + mlp


# ----------------------------------- main --------------------------------------

if __name__ == "__main__":
    B, C, H, W = 2, 32, 8, 8
    num_heads, mlp_ratio = 4, 4.0
    N = H * W

    key = jax.random.PRNGKey(0)
    kx, kp1, kp2 = jax.random.split(key, 3)
    x = jax.random.normal(kx, (B, N, C), jnp.float32)

    # bf16 MXU operands with f32 accumulation -> relaxed tolerance vs f32 reference.
    # row_tile=32 exercises a multi-step (batch x row-tile) parallel grid.
    for sr_ratio, kp in ((2, kp1), (1, kp2)):
        params = init_params(kp, C, num_heads, mlp_ratio, sr_ratio)
        out = pvt_block_forward(x, params, H, W, num_heads=num_heads,
                                sr_ratio=sr_ratio, row_tile=32)
        out = jax.block_until_ready(out)
        ref = block_reference(x, params, H, W, num_heads=num_heads, sr_ratio=sr_ratio)
        assert out.shape == (B, N, C)
        np.testing.assert_allclose(np.asarray(out), np.asarray(ref),
                                   rtol=2e-2, atol=2e-2)

    print("KERNEL_OK")
</pallas_src>

<mosaic_0001>
module attributes {stable_mosaic.version = 11 : i64} {
  func.func @_kv_sr_kernel(%arg0: i32, %arg1: memref<1x16x512xf32, #tpu.memory_space<vmem>>, %arg2: memref<1x128xf32, #tpu.memory_space<vmem>>, %arg3: memref<1x128xf32, #tpu.memory_space<vmem>>, %arg4: memref<512x128xbf16, #tpu.memory_space<vmem>>, %arg5: memref<1x128xf32, #tpu.memory_space<vmem>>, %arg6: memref<1x128xf32, #tpu.memory_space<vmem>>, %arg7: memref<1x128xf32, #tpu.memory_space<vmem>>, %arg8: memref<128x256xbf16, #tpu.memory_space<vmem>>, %arg9: memref<1x16x128xbf16, #tpu.memory_space<vmem>>, %arg10: memref<1x16x128xbf16, #tpu.memory_space<vmem>>) attributes {dimension_semantics = [#tpu.dimension_semantics<parallel>], iteration_bounds = array<i64: 2>, scalar_prefetch = 0 : i64, scratch_operands = 0 : i64, tpu.core_type = #tpu.core_type<tc>, window_params = [{transform_indices = @transform_0, window_bounds = array<i64: 1, 16, 512>}, {pipeline_mode = #tpu.pipeline_mode<synchronous>, transform_indices = @transform_1, window_bounds = array<i64: 1, 128>}, {pipeline_mode = #tpu.pipeline_mode<synchronous>, transform_indices = @transform_2, window_bounds = array<i64: 1, 128>}, {pipeline_mode = #tpu.pipeline_mode<synchronous>, transform_indices = @transform_3, window_bounds = array<i64: 512, 128>}, {pipeline_mode = #tpu.pipeline_mode<synchronous>, transform_indices = @transform_4, window_bounds = array<i64: 1, 128>}, {pipeline_mode = #tpu.pipeline_mode<synchronous>, transform_indices = @transform_5, window_bounds = array<i64: 1, 128>}, {pipeline_mode = #tpu.pipeline_mode<synchronous>, transform_indices = @transform_6, window_bounds = array<i64: 1, 128>}, {pipeline_mode = #tpu.pipeline_mode<synchronous>, transform_indices = @transform_7, window_bounds = array<i64: 128, 256>}, {transform_indices = @transform_8, window_bounds = array<i64: 1, 16, 128>}, {transform_indices = @transform_9, window_bounds = array<i64: 1, 16, 128>}]} {
    %0 = tpu.iota {dimensions = array<i32: 1>} : vector<1x128xi32>
    %c32_i32 = arith.constant 32 : i32
    %1 = vector.broadcast %c32_i32 : i32 to vector<1x128xi32>
    %2 = arith.cmpi slt, %0, %1 : vector<1x128xi32>
    %c0 = arith.constant 0 : index
    %c0_0 = arith.constant 0 : index
    %c0_1 = arith.constant 0 : index
    %3 = vector.load %arg1[%c0, %c0_0, %c0_1] : memref<1x16x512xf32, #tpu.memory_space<vmem>>, vector<1x16x512xf32>
    %4 = vector.shape_cast %3 : vector<1x16x512xf32> to vector<16x512xf32>
    %c0_2 = arith.constant 0 : index
    %c0_3 = arith.constant 0 : index
    %5 = vector.load %arg2[%c0_2, %c0_3] : memref<1x128xf32, #tpu.memory_space<vmem>>, vector<1x128xf32>
    %6 = vector.shape_cast %5 : vector<1x128xf32> to vector<1x128xf32>
    %7 = vector.broadcast %6 : vector<1x128xf32> to vector<16x128xf32>
    %c0_4 = arith.constant 0 : index
    %c0_5 = arith.constant 0 : index
    %8 = vector.load %arg3[%c0_4, %c0_5] : memref<1x128xf32, #tpu.memory_space<vmem>>, vector<1x128xf32>
    %9 = vector.shape_cast %8 : vector<1x128xf32> to vector<1x128xf32>
    %10 = vector.broadcast %9 : vector<1x128xf32> to vector<16x128xf32>
    %11 = vector.extract_strided_slice %4 {offsets = [0, 0], sizes = [16, 128], strides = [1, 1]} : vector<16x512xf32> to vector<16x128xf32>
    %cst = arith.constant dense<0.000000e+00> : vector<16xf32>
    %12 = vector.multi_reduction <add>, %11, %cst [1] : vector<16x128xf32> to vector<16xf32>
    %13 = vector.shape_cast %12 : vector<16xf32> to vector<16x1xf32>
    %cst_6 = arith.constant 3.125000e-02 : f32
    %14 = vector.broadcast %cst_6 : f32 to vector<16x1xf32>
    %15 = arith.mulf %13, %14 : vector<16x1xf32>
    %16 = vector.broadcast %15 : vector<16x1xf32> to vector<16x128xf32>
    %17 = arith.subf %11, %16 : vector<16x128xf32>
    %cst_7 = arith.constant 0.000000e+00 : f32
    %18 = vector.shape_cast %2 : vector<1x128xi1> to vector<1x128xi1>
    %19 = vector.broadcast %18 : vector<1x128xi1> to vector<16x128xi1>
    %20 = vector.broadcast %cst_7 : f32 to vector<16x128xf32>
    %21 = arith.select %19, %17, %20 : vector<16x128xi1>, vector<16x128xf32>
    %22 = arith.mulf %21, %21 : vector<16x128xf32>
    %cst_8 = arith.constant dense<0.000000e+00> : vector<16xf32>
    %23 = vector.multi_reduction <add>, %22, %cst_8 [1] : vector<16x128xf32> to vector<16xf32>
    %24 = vector.shape_cast %23 : vector<16xf32> to vector<16x1xf32>
    %cst_9 = arith.constant 3.125000e-02 : f32
    %25 = vector.broadcast %cst_9 : f32 to vector<16x1xf32>
    %26 = arith.mulf %24, %25 : vector<16x1xf32>
    %cst_10 = arith.constant 9.99999974E-6 : f32
    %27 = vector.broadcast %cst_10 : f32 to vector<16x1xf32>
    %28 = arith.addf %26, %27 : vector<16x1xf32>
    %29 = math.rsqrt %28 : vector<16x1xf32>
    %30 = vector.broadcast %29 : vector<16x1xf32> to vector<16x128xf32>
    %31 = arith.mulf %21, %30 : vector<16x128xf32>
    %32 = arith.mulf %31, %7 : vector<16x128xf32>
    %33 = arith.addf %32, %10 : vector<16x128xf32>
    %34 = vector.extract_strided_slice %4 {offsets = [0, 128], sizes = [16, 128], strides = [1, 1]} : vector<16x512xf32> to vector<16x128xf32>
    %cst_11 = arith.constant dense<0.000000e+00> : vector<16xf32>
    %35 = vector.multi_reduction <add>, %34, %cst_11 [1] : vector<16x128xf32> to vector<16xf32>
    %36 = vector.shape_cast %35 : vector<16xf32> to vector<16x1xf32>
    %cst_12 = arith.constant 3.125000e-02 : f32
    %37 = vector.broadcast %cst_12 : f32 to vector<16x1xf32>
    %38 = arith.mulf %36, %37 : vector<16x1xf32>
    %39 = vector.broadcast %38 : vector<16x1xf32> to vector<16x128xf32>
    %40 = arith.subf %34, %39 : vector<16x128xf32>
    %cst_13 = arith.constant 0.000000e+00 : f32
    %41 = vector.shape_cast %2 : vector<1x128xi1> to vector<1x128xi1>
    %42 = vector.broadcast %41 : vector<1x128xi1> to vector<16x128xi1>
    %43 = vector.broadcast %cst_13 : f32 to vector<16x128xf32>
    %44 = arith.select %42, %40, %43 : vector<16x128xi1>, vector<16x128xf32>
    %45 = arith.mulf %44, %44 : vector<16x128xf32>
    %cst_14 = arith.constant dense<0.000000e+00> : vector<16xf32>
    %46 = vector.multi_reduction <add>, %45, %cst_14 [1] : vector<16x128xf32> to vector<16xf32>
    %47 = vector.shape_cast %46 : vector<16xf32> to vector<16x1xf32>
    %cst_15 = arith.constant 3.125000e-02 : f32
    %48 = vector.broadcast %cst_15 : f32 to vector<16x1xf32>
    %49 = arith.mulf %47, %48 : vector<16x1xf32>
    %cst_16 = arith.constant 9.99999974E-6 : f32
    %50 = vector.broadcast %cst_16 : f32 to vector<16x1xf32>
    %51 = arith.addf %49, %50 : vector<16x1xf32>
    %52 = math.rsqrt %51 : vector<16x1xf32>
    %53 = vector.broadcast %52 : vector<16x1xf32> to vector<16x128xf32>
    %54 = arith.mulf %44, %53 : vector<16x128xf32>
    %55 = arith.mulf %54, %7 : vector<16x128xf32>
    %56 = arith.addf %55, %10 : vector<16x128xf32>
    %57 = vector.extract_strided_slice %4 {offsets = [0, 256], sizes = [16, 128], strides = [1, 1]} : vector<16x512xf32> to vector<16x128xf32>
    %cst_17 = arith.constant dense<0.000000e+00> : vector<16xf32>
    %58 = vector.multi_reduction <add>, %57, %cst_17 [1] : vector<16x128xf32> to vector<16xf32>
    %59 = vector.shape_cast %58 : vector<16xf32> to vector<16x1xf32>
    %cst_18 = arith.constant 3.125000e-02 : f32
    %60 = vector.broadcast %cst_18 : f32 to vector<16x1xf32>
    %61 = arith.mulf %59, %60 : vector<16x1xf32>
    %62 = vector.broadcast %61 : vector<16x1xf32> to vector<16x128xf32>
    %63 = arith.subf %57, %62 : vector<16x128xf32>
    %cst_19 = arith.constant 0.000000e+00 : f32
    %64 = vector.shape_cast %2 : vector<1x128xi1> to vector<1x128xi1>
    %65 = vector.broadcast %64 : vector<1x128xi1> to vector<16x128xi1>
    %66 = vector.broadcast %cst_19 : f32 to vector<16x128xf32>
    %67 = arith.select %65, %63, %66 : vector<16x128xi1>, vector<16x128xf32>
    %68 = arith.mulf %67, %67 : vector<16x128xf32>
    %cst_20 = arith.constant dense<0.000000e+00> : vector<16xf32>
    %69 = vector.multi_reduction <add>, %68, %cst_20 [1] : vector<16x128xf32> to vector<16xf32>
    %70 = vector.shape_cast %69 : vector<16xf32> to vector<16x1xf32>
    %cst_21 = arith.constant 3.125000e-02 : f32
    %71 = vector.broadcast %cst_21 : f32 to vector<16x1xf32>
    %72 = arith.mulf %70, %71 : vector<16x1xf32>
    %cst_22 = arith.constant 9.99999974E-6 : f32
    %73 = vector.broadcast %cst_22 : f32 to vector<16x1xf32>
    %74 = arith.addf %72, %73 : vector<16x1xf32>
    %75 = math.rsqrt %74 : vector<16x1xf32>
    %76 = vector.broadcast %75 : vector<16x1xf32> to vector<16x128xf32>
    %77 = arith.mulf %67, %76 : vector<16x128xf32>
    %78 = arith.mulf %77, %7 : vector<16x128xf32>
    %79 = arith.addf %78, %10 : vector<16x128xf32>
    %80 = vector.extract_strided_slice %4 {offsets = [0, 384], sizes = [16, 128], strides = [1, 1]} : vector<16x512xf32> to vector<16x128xf32>
    %cst_23 = arith.constant dense<0.000000e+00> : vector<16xf32>
    %81 = vector.multi_reduction <add>, %80, %cst_23 [1] : vector<16x128xf32> to vector<16xf32>
    %82 = vector.shape_cast %81 : vector<16xf32> to vector<16x1xf32>
    %cst_24 = arith.constant 3.125000e-02 : f32
    %83 = vector.broadcast %cst_24 : f32 to vector<16x1xf32>
    %84 = arith.mulf %82, %83 : vector<16x1xf32>
    %85 = vector.broadcast %84 : vector<16x1xf32> to vector<16x128xf32>
    %86 = arith.subf %80, %85 : vector<16x128xf32>
    %cst_25 = arith.constant 0.000000e+00 : f32
    %87 = vector.shape_cast %2 : vector<1x128xi1> to vector<1x128xi1>
    %88 = vector.broadcast %87 : vector<1x128xi1> to vector<16x128xi1>
    %89 = vector.broadcast %cst_25 : f32 to vector<16x128xf32>
    %90 = arith.select %88, %86, %89 : vector<16x128xi1>, vector<16x128xf32>
    %91 = arith.mulf %90, %90 : vector<16x128xf32>
    %cst_26 = arith.constant dense<0.000000e+00> : vector<16xf32>
    %92 = vector.multi_reduction <add>, %91, %cst_26 [1] : vector<16x128xf32> to vector<16xf32>
    %93 = vector.shape_cast %92 : vector<16xf32> to vector<16x1xf32>
    %cst_27 = arith.constant 3.125000e-02 : f32
    %94 = vector.broadcast %cst_27 : f32 to vector<16x1xf32>
    %95 = arith.mulf %93, %94 : vector<16x1xf32>
    %cst_28 = arith.constant 9.99999974E-6 : f32
    %96 = vector.broadcast %cst_28 : f32 to vector<16x1xf32>
    %97 = arith.addf %95, %96 : vector<16x1xf32>
    %98 = math.rsqrt %97 : vector<16x1xf32>
    %99 = vector.broadcast %98 : vector<16x1xf32> to vector<16x128xf32>
    %100 = arith.mulf %90, %99 : vector<16x128xf32>
    %101 = arith.mulf %100, %7 : vector<16x128xf32>
    %102 = arith.addf %101, %10 : vector<16x128xf32>
    %103 = tpu.concatenate %33, %56, %79, %102 in 1 : vector<16x128xf32>, vector<16x128xf32>, vector<16x128xf32>, vector<16x128xf32> -> vector<16x512xf32>
    %104 = arith.truncf %103 : vector<16x512xf32> to vector<16x512xbf16>
    %c0_29 = arith.constant 0 : index
    %c0_30 = arith.constant 0 : index
    %105 = vector.load %arg4[%c0_29, %c0_30] : memref<512x128xbf16, #tpu.memory_space<vmem>>, vector<512x128xbf16>
    %cst_31 = arith.constant dense<0.000000e+00> : vector<16x128xf32>
    %106 = tpu.matmul %104, %105, %cst_31 {dimension_numbers = #tpu.dot_dimension_numbers<[1], [0], [0], [1], [0, 0, 1, 1], [], []>} : vector<16x512xbf16>, vector<512x128xbf16>, vector<16x128xf32> -> vector<16x128xf32>
    %c0_32 = arith.constant 0 : index
    %c0_33 = arith.constant 0 : index
    %107 = vector.load %arg5[%c0_32, %c0_33] : memref<1x128xf32, #tpu.memory_space<vmem>>, vector<1x128xf32>
    %108 = vector.broadcast %107 : vector<1x128xf32> to vector<16x128xf32>
    %109 = arith.addf %106, %108 : vector<16x128xf32>
    %c0_34 = arith.constant 0 : index
    %c0_35 = arith.constant 0 : index
    %110 = vector.load %arg6[%c0_34, %c0_35] : memref<1x128xf32, #tpu.memory_space<vmem>>, vector<1x128xf32>
    %c0_36 = arith.constant 0 : index
    %c0_37 = arith.constant 0 : index
    %111 = vector.load %arg7[%c0_36, %c0_37] : memref<1x128xf32, #tpu.memory_space<vmem>>, vector<1x128xf32>
    %cst_38 = arith.constant dense<0.000000e+00> : vector<16xf32>
    %112 = vector.multi_reduction <add>, %109, %cst_38 [1] : vector<16x128xf32> to vector<16xf32>
    %113 = vector.shape_cast %112 : vector<16xf32> to vector<16x1xf32>
    %cst_39 = arith.constant 3.125000e-02 : f32
    %114 = vector.broadcast %cst_39 : f32 to vector<16x1xf32>
    %115 = arith.mulf %113, %114 : vector<16x1xf32>
    %116 = vector.broadcast %115 : vector<16x1xf32> to vector<16x128xf32>
    %117 = arith.subf %109, %116 : vector<16x128xf32>
    %cst_40 = arith.constant 0.000000e+00 : f32
    %118 = vector.shape_cast %2 : vector<1x128xi1> to vector<1x128xi1>
    %119 = vector.broadcast %118 : vector<1x128xi1> to vector<16x128xi1>
    %120 = vector.broadcast %cst_40 : f32 to vector<16x128xf32>
    %121 = arith.select %119, %117, %120 : vector<16x128xi1>, vector<16x128xf32>
    %122 = arith.mulf %121, %121 : vector<16x128xf32>
    %cst_41 = arith.constant dense<0.000000e+00> : vector<16xf32>
    %123 = vector.multi_reduction <add>, %122, %cst_41 [1] : vector<16x128xf32> to vector<16xf32>
    %124 = vector.shape_cast %123 : vector<16xf32> to vector<16x1xf32>
    %cst_42 = arith.constant 3.125000e-02 : f32
    %125 = vector.broadcast %cst_42 : f32 to vector<16x1xf32>
    %126 = arith.mulf %124, %125 : vector<16x1xf32>
    %cst_43 = arith.constant 9.99999974E-6 : f32
    %127 = vector.broadcast %cst_43 : f32 to vector<16x1xf32>
    %128 = arith.addf %126, %127 : vector<16x1xf32>
    %129 = math.rsqrt %128 : vector<16x1xf32>
    %130 = vector.broadcast %129 : vector<16x1xf32> to vector<16x128xf32>
    %131 = arith.mulf %121, %130 : vector<16x128xf32>
    %132 = vector.broadcast %110 : vector<1x128xf32> to vector<16x128xf32>
    %133 = arith.mulf %131, %132 : vector<16x128xf32>
    %134 = vector.broadcast %111 : vector<1x128xf32> to vector<16x128xf32>
    %135 = arith.addf %133, %134 : vector<16x128xf32>
    %136 = arith.truncf %135 : vector<16x128xf32> to vector<16x128xbf16>
    %c0_44 = arith.constant 0 : index
    %c0_45 = arith.constant 0 : index
    %137 = vector.load %arg8[%c0_44, %c0_45] : memref<128x256xbf16, #tpu.memory_space<vmem>>, vector<128x256xbf16>
    %cst_46 = arith.constant dense<0.000000e+00> : vector<16x256xf32>
    %138 = tpu.matmul %136, %137, %cst_46 {dimension_numbers = #tpu.dot_dimension_numbers<[1], [0], [0], [1], [0, 0, 1, 1], [], []>} : vector<16x128xbf16>, vector<128x256xbf16>, vector<16x256xf32> -> vector<16x256xf32>
    %139 = vector.extract_strided_slice %138 {offsets = [0, 0], sizes = [16, 128], strides = [1, 1]} : vector<16x256xf32> to vector<16x128xf32>
    %140 = arith.truncf %139 : vector<16x128xf32> to vector<16x128xbf16>
    %c0_47 = arith.constant 0 : index
    %c0_48 = arith.constant 0 : index
    %c0_49 = arith.constant 0 : index
    %141 = vector.load %arg9[%c0_47, %c0_48, %c0_49] : memref<1x16x128xbf16, #tpu.memory_space<vmem>>, vector<1x16x128xbf16>
    %142 = vector.shape_cast %141 : vector<1x16x128xbf16> to vector<16x128xbf16>
    %143 = vector.shape_cast %140 : vector<16x128xbf16> to vector<1x16x128xbf16>
    tpu.vector_store %arg9[%c0_47, %c0_48, %c0_49], %143 {strides = array<i32>} : memref<1x16x128xbf16, #tpu.memory_space<vmem>>, vector<1x16x128xbf16>,
    %144 = vector.extract_strided_slice %138 {offsets = [0, 128], sizes = [16, 128], strides = [1, 1]} : vector<16x256xf32> to vector<16x128xf32>
    %145 = arith.truncf %144 : vector<16x128xf32> to vector<16x128xbf16>
    %c0_50 = arith.constant 0 : index
    %c0_51 = arith.constant 0 : index
    %c0_52 = arith.constant 0 : index
    %146 = vector.load %arg10[%c0_50, %c0_51, %c0_52] : memref<1x16x128xbf16, #tpu.memory_space<vmem>>, vector<1x16x128xbf16>
    %147 = vector.shape_cast %146 : vector<1x16x128xbf16> to vector<16x128xbf16>
    %148 = vector.shape_cast %145 : vector<16x128xbf16> to vector<1x16x128xbf16>
    tpu.vector_store %arg10[%c0_50, %c0_51, %c0_52], %148 {strides = array<i32>} : memref<1x16x128xbf16, #tpu.memory_space<vmem>>, vector<1x16x128xbf16>,
    return
  }
  func.func @transform_0(%arg0: i32) -> (i32, i32, i32) {
    %c0_i32 = arith.constant 0 : i32
    %c0_i32_0 = arith.constant 0 : i32
    %c0_i32_1 = arith.constant 0 : i32
    return %arg0, %c0_i32, %c0_i32_0 : i32, i32, i32
  }
  func.func @transform_1(%arg0: i32) -> (i32, i32) {
    %c0_i32 = arith.constant 0 : i32
    %c0_i32_0 = arith.constant 0 : i32
    %c0_i32_1 = arith.constant 0 : i32
    return %c0_i32, %c0_i32_0 : i32, i32
  }
  func.func @transform_2(%arg0: i32) -> (i32, i32) {
    %c0_i32 = arith.constant 0 : i32
    %c0_i32_0 = arith.constant 0 : i32
    %c0_i32_1 = arith.constant 0 : i32
    return %c0_i32, %c0_i32_0 : i32, i32
  }
  func.func @transform_3(%arg0: i32) -> (i32, i32) {
    %c0_i32 = arith.constant 0 : i32
    %c0_i32_0 = arith.constant 0 : i32
    %c0_i32_1 = arith.constant 0 : i32
    return %c0_i32, %c0_i32_0 : i32, i32
  }
  func.func @transform_4(%arg0: i32) -> (i32, i32) {
    %c0_i32 = arith.constant 0 : i32
    %c0_i32_0 = arith.constant 0 : i32
    %c0_i32_1 = arith.constant 0 : i32
    return %c0_i32, %c0_i32_0 : i32, i32
  }
  func.func @transform_5(%arg0: i32) -> (i32, i32) {
    %c0_i32 = arith.constant 0 : i32
    %c0_i32_0 = arith.constant 0 : i32
    %c0_i32_1 = arith.constant 0 : i32
    return %c0_i32, %c0_i32_0 : i32, i32
  }
  func.func @transform_6(%arg0: i32) -> (i32, i32) {
    %c0_i32 = arith.constant 0 : i32
    %c0_i32_0 = arith.constant 0 : i32
    %c0_i32_1 = arith.constant 0 : i32
    return %c0_i32, %c0_i32_0 : i32, i32
  }
  func.func @transform_7(%arg0: i32) -> (i32, i32) {
    %c0_i32 = arith.constant 0 : i32
    %c0_i32_0 = arith.constant 0 : i32
    %c0_i32_1 = arith.constant 0 : i32
    return %c0_i32, %c0_i32_0 : i32, i32
  }
  func.func @transform_8(%arg0: i32) -> (i32, i32, i32) {
    %c0_i32 = arith.constant 0 : i32
    %c0_i32_0 = arith.constant 0 : i32
    %c0_i32_1 = arith.constant 0 : i32
    return %arg0, %c0_i32, %c0_i32_0 : i32, i32, i32
  }
  func.func @transform_9(%arg0: i32) -> (i32, i32, i32) {
    %c0_i32 = arith.constant 0 : i32
    %c0_i32_0 = arith.constant 0 : i32
    %c0_i32_1 = arith.constant 0 : i32
    return %arg0, %c0_i32, %c0_i32_0 : i32, i32, i32
  }
}

</mosaic_0001>

<bundles_post_ra>
// kernel: tpu_custom_call.1
= control target key start
LH: loop header
LB: loop body
LE: loop exit
PB: predicated region body
PF: predicated region fallthrough
CT: control target
= control target key end

     0   :  { %s2352_s0 = inlined_call_operand.hbm [shape: f32[2,16,512], index: 0, kind: input, shape index: {}]   ;;  %s2353_s1 = inlined_call_operand.hbm [shape: f32[1,128], index: 1, kind: input, shape index: {}]   ;;  %s2354_s2 = inlined_call_operand.vmem [shape: f32[1,128], index: 2, kind: input, shape index: {}]   ;;  %s2355_s3 = inlined_call_operand.hbm [shape: bf16[512,128], index: 3, kind: input, shape index: {}]   ;;  %s2356_s4 = inlined_call_operand.vmem [shape: f32[1,128], index: 4, kind: input, shape index: {}]   ;;  %s2357_s5 = inlined_call_operand.vmem [shape: f32[1,128], index: 5, kind: input, shape index: {}]   ;;  %s2358_s6 = inlined_call_operand.vmem [shape: f32[1,128], index: 6, kind: input, shape index: {}]   ;;  %s2359_s7 = inlined_call_operand.hbm [shape: bf16[128,256], index: 7, kind: input, shape index: {}]   ;;  %s2360_s8 = inlined_call_operand.hbm [shape: bf16[2,16,128], index: 8, kind: output, shape index: {0}]   ;;  %s2361_s9 = inlined_call_operand.hbm [shape: bf16[2,16,128], index: 9, kind: output, shape index: {1}]  }
   0x1   :  { %2362 = sst [smem:[#allocation18_spill]] %s2353_s1 }
   0x2   :  { %2363 = sst [smem:[#allocation19_spill]] %s2355_s3 }
   0x3   :  { %2364 = sst [smem:[#allocation20_spill]] %s2359_s7 }
   0x4   :  { %15 = vsyncpa [#allocation3], 0 }
   0x5   :  { %17 = vsyncpa [#allocation3 + $0x1], 0 }
   0x6   :  { %18 = vsyncpa [#allocation6], 0 }
   0x7   :  { %19 = vsyncpa [#allocation9], 0 }
   0x8   :  { %20 = vsyncpa [#allocation4], 0 }
   0x9   :  { %22 = vsyncpa [#allocation4 + $0x1], 0 }
   0xa   :  { %23 = vsyncpa [#allocation12], 0 }
   0xb   :  { %25 = vsyncpa [#allocation12 + $0x1], 0  ;;  %s1978_s30 = smov 0   ;;  %s1980_s10 = smov 0  }
   0xc   :  { %s1982_s11 = smov 0   ;;  %s1984_s12 = smov 0  }
   0xd LB: > { %s1999_s13 = sadd.s32 4294967295, %s1915_s12   ;;  %s1297_s14 = sadd.s32 4294967294, %s1915_s12   ;;  %s1915_s12 = sphi %s1984_s12, %s2386_s12   ;;  %s1911_s11 = sphi %s1982_s11, %s2385_s11   ;;  %s1907_s10 = sphi %s1980_s10, %s2384_s10   ;;  %s1903_s30 = sphi %s1978_s30, %s2383_s30  }
   0xe   : > { %p51_p0 = scmp.ne.s32.totalorder %s1907_s10, %s1903_s30  ;;  %p52_p1 = scmp.eq.s32.totalorder %s1999_s13, 0 }
   0xf   : > { %p222_p2 = scmp.eq.s32.totalorder %s1999_s13, 1  ;;  %p228_p3 = scmp.eq.s32.totalorder %s1297_s14, 1 }
  0x10   : > { %p2008_p4 = por %p52_p1, %p51_p0  ;;  %p1298_p5 = scmp.ge.s32.totalorder %s1915_s12, 1 }
  0x11   : > { %p2013_p6 = por %p228_p3, %p51_p0  ;;  %p261_p7 = scmp.lt.s32.totalorder %s1915_s12, 3 }
  0x12   : > { %s2367_s1 = sld [smem:[#allocation18_spill]]  ;;  %s1917_s21 = smov [#allocation5]  }
  0x13   : > { %p2021_p8 = pnand %p1298_p5, %p261_p7  ;;  %s275_s22 = sshll.u32 %s1917_s21, 4  ;;  %s276_s22 = int_to_ptr.vmem [resolvable:$true] %s275_s22 }
  0x14   : > { %s2369_s3 = sld [smem:[#allocation19_spill]]  ;;  %s1918_s27 = smov [#allocation7]  }
  0x15   : > { %p1592_p10 = pneg %p2021_p8  ;;  %s289_s28 = sshll.u32 %s1918_s27, 4  ;;  %s290_s28 = int_to_ptr.vmem [resolvable:$true] %s289_s28 }
  0x16   : > { %s1919_s29 = smov 64   ;;  %s1920_s14 = smov 4  }
  0x17   : > { %p2033_p11 = pnand %p1592_p10, %p52_p1  ;;  %s2371_s7 = sld [smem:[#allocation20_spill]] }
  0x18   : > { %s273_s19 = sshll.u32 %s2367_s1, 4  ;;  %s1921_s23 = smov [#allocation8]   ;;  %s274_s19 = int_to_ptr.hbm [resolvable:$true] %s273_s19 }
  0x19   : > { %1595 = dma.hbm_to_vmem [thread:$0]  (!%p2033_p11), %s274_s19, 16, %s276_s22, [#allocation6]  }
  0x1a   : > { %s287_s25 = sshll.u32 %s2369_s3, 4  ;;  %s312_s24 = sshll.u32 %s1921_s23, 4  ;;  %s288_s25 = int_to_ptr.hbm [resolvable:$true] %s287_s25  ;;  %s313_s24 = int_to_ptr.vmem [resolvable:$true] %s312_s24 }
  0x1b   : > { %1598 = dma.hbm_to_vmem [thread:$0]  (!%p2033_p11), %s288_s25, 4096, %s290_s28, [#allocation6], %s1919_s29, %s1919_s29, %s1920_s14  }
  0x1c   : > { %s1922_s19 = smov 128   ;;  %s1923_s22 = smov 8  }
  0x1d   : > { %s310_s21 = sshll.u32 %s2371_s7, 4  ;;  %s2047_s27 = sadd.s32 1, %s1915_s12   ;;  %s311_s21 = int_to_ptr.hbm [resolvable:$true] %s310_s21 }
  0x1e   : > { %1601 = dma.hbm_to_vmem [thread:$0]  (!%p2033_p11), %s311_s21, 2048, %s313_s24, [#allocation9], %s1922_s19, %s1922_s19, %s1923_s22  }
  0x1f   : > { %s35_s25 = ssub.s32 %s1915_s12, %s2047_s27  ;;  %s38_s28 = sadd.s32 1, %s1911_s11 }
  0x20   : > { %p36_p12 = scmp.eq.s32.totalorder %s35_s25, 0  ;;  %p45_p13 = scmp.ne.s32.totalorder %s1911_s11, %s1907_s10 }
  0x21   : > { %p46_p0 = scmp.eq.s32.totalorder %s1915_s12, 0  ;;  %p1616_p3 = scmp.lt.s32.totalorder %s1915_s12, 2 }
  0x22   : > { %s2057_s29 = scalar_select %p36_p12, %s1911_s11, %s38_s28  }
  0x23   : > { %p47_p5 = por %p46_p0, %p45_p13  ;;  %p2061_p7 = por %p222_p2, %p45_p13 }
  0x24   : > { %s326_s26 = sand.u32 1, %s1911_s11   ;;  %s1513_s17 = sshll.u32 %s1915_s12, 6 }
  0x25   : > { %s1303_s18 = sshll.u32 %s326_s26, 6  ;;  %s335_s24 = scalar_lea.hbm %s2352_s0, %s1513_s17 }
  0x26   : > { %s336_s19 = sshll.u32 %s335_s24, 4  ;;  %s330_s22 = scalar_lea.vmem [#allocation2], %s1303_s18  ;;  %s337_s19 = int_to_ptr.hbm [resolvable:$true] %s336_s19 }
  0x27   : > { %s338_s25 = sshll.u32 %s330_s22, 4  ;;  %p2072_p10 = pnand %p1616_p3, %p47_p5  ;;  %s339_s25 = int_to_ptr.vmem [resolvable:$true] %s338_s25 }
  0x28   : > { %s327_s1 = scalar_lea.sflag [#allocation3], %s326_s26  ;;  %s1779_s3 = sshra.s32 %s337_s19, 4  ;;  %s1780_s3 = int_to_ptr.hbm [resolvable:$true] %s1779_s3 }
  0x29   : > { %s1781_s7 = scalar_lea.hbm %s1780_s3, 64  ;;  %p1783_p11 = pneg %p2072_p10 }
  0x2a   : > { %p1782_p2 = scmp.ne.s32.totalorder %s1780_s3, %s1781_s7  ;;  %s1786_s21 = scalar_lea.hbm %s2352_s0, 128 }
  0x2b   : > { %p1787_p0 = scmp.lt.s32.totalorder %s1780_s3, %s2352_s0  ;;  %p1788_p3 = scmp.lt.s32.totalorder %s1786_s21, %s1781_s7 }
  0x2c   : > { %p1784_p12 = pnand %p1783_p11, %p1782_p2 }
  0x2d   : > { %p1789_p5 = por %p1788_p3, %p1787_p0 }
  0x2e   : > { %p1785_p13 = pneg %p1784_p12 }
  0x30   : > { %p1790_p9 = pnand %p1789_p5, %p1785_p13 }
  0x32   : > { %1793 = shalt.err (!%p1790_p9)
}
  0x33   : > { %s1924_s26 = smov 512   ;;  %s1925_s22 = smov 32  }
  0x34   : > { %1605 = dma.hbm_to_vmem [thread:$0]  (!%p2072_p10), %s337_s19, 1024, %s339_s25, %s327_s1, %s1924_s26, %s1924_s26, %s1925_s22  }
  0x35   : > { %350 = sbr.rel (%p2021_p8) target bundleno = 919 (0x397), region = 52  ;;  %s2089_s17 = sand.u32 (!%p2021_p8), 1, %s1907_s10  }
  0x36   : > { %s1307_s18 = sshll.u32 (!%p2021_p8), %s2089_s17, 6  ;;  %s353_s3 = scalar_lea.sflag (!%p2021_p8), [#allocation3], %s2089_s17 }
  0x37   : > { %s356_s7 = scalar_lea.vmem (!%p2021_p8), [#allocation2], %s1307_s18 }
  0x3a   : > { %1882 = dma.done.wait (%p2008_p4), %s353_s3, 1024  }
  0x3b   : > { %1884 = vsyncadd (%p2008_p4), %s353_s3, 4294966272 }
  0x3c   : > { %1886 = dma.done.wait (%p52_p1), [#allocation6], 4112  }
  0x3d   : > { %1888 = vsyncadd (%p52_p1), [#allocation6], 4294963184 }
  0x3e   : > { %1890 = dma.done.wait (%p52_p1), [#allocation9], 2048  }
  0x3f   : > { %1892 = vsyncadd (%p52_p1), [#allocation9], 4294965248  ;;  %v418_v0 = vld [vmem:[%s356_s7 + $0x18] sm:$0xff]  ;;  %v417_v1 = vld [vmem:[%s356_s7 + $0x10] sm:$0xff]  ;;  %v412_v8 = vlaneseq  ;;  %s1311_s24 = sshll.u32 %s2089_s17, 3  ;;  %s1562_s26 = sshll.u32 %s1999_s13, 3 }
  0x40   : > { %v415_v2 = vld [vmem:[%s356_s7] sm:$0xff]  ;;  %571 = vadd.xlane.f32.xlu2 %v418_v0  ;;  %525 = vadd.xlane.f32.xlu0 %v417_v1  ;;  %v422_v3 = vld [vmem:[%s356_s7 + $0x38] sm:$0xff]  ;;  %v421_v4 = vld [vmem:[%s356_s7 + $0x30] sm:$0xff]  ;;  %s404_s22 = scalar_lea.vmem [#allocation10], %s1311_s24  ;;  %s1141_s1 = scalar_lea.hbm %s2360_s8, %s1562_s26 }
  0x41   : > { %431 = vadd.xlane.f32.xlu1 %v415_v2  ;;  %v419_v5 = vld [vmem:[%s356_s7 + $0x20] sm:$0xff]  ;;  %v416_v6 = vld [vmem:[%s356_s7 + $0x8] sm:$0xff]  ;;  %v2105_v9 = vand.u32 127, %v412_v8  ;;  %v1520_v52 = vld [vmem:[#allocation7 + $0x30] sm:$0xff]  ;;  %s1142_s18 = sshll.u32 %s404_s22, 4  ;;  %s411_s15 = scalar_lea.vmem [#allocation11], %s1311_s24  ;;  %s2302_s18 = int_to_ptr.vmem [resolvable:$true] %s1142_s18 }
  0x42   : > { %v420_v7 = vld [vmem:[%s356_s7 + $0x28] sm:$0xff]  ;;  %v1521_v50 = vld [vmem:[#allocation7 + $0x38] sm:$0xff]  ;;  %v1536_v53 = vld [vmem:[#allocation7 + $0xb0] sm:$0xff]  ;;  %s1159_s20 = sshll.u32 %s411_s15, 4  ;;  %s1158_s28 = scalar_lea.hbm %s2361_s9, %s1562_s26  ;;  %s2304_s20 = int_to_ptr.vmem [resolvable:$true] %s1159_s20 }
  0x43   : > { %vm414_vm0 = vcmp.lt.s32.totalorder %v2105_v9, 32  ;;  %v1537_v51 = vld [vmem:[#allocation7 + $0xb8] sm:$0xff]  ;;  %881 = vmatpush.bf16.msra.mxu0 %v1521_v50  ;;  %v1519_v54 = vld [vmem:[#allocation7 + $0x28] sm:$0xff]  ;;  %v1518_v57 = vld [vmem:[#allocation7 + $0x20] sm:$0xff]  ;;  %s1144_s21 = sshll.u32 %s1141_s1, 4  ;;  %s1161_s13 = sshll.u32 %s1158_s28, 4  ;;  %s1145_s21 = int_to_ptr.hbm [resolvable:$true] %s1144_s21  ;;  %s2306_s13 = int_to_ptr.hbm [resolvable:$true] %s1161_s13 }
  0x44   : > { %909 = vmatpush.bf16.msra.mxu2 %v1537_v51  ;;  %v1535_v55 = vld [vmem:[#allocation7 + $0xa8] sm:$0xff]  ;;  %v1545_v56 = vld [vmem:[#allocation7 + $0xf8] sm:$0xff]  ;;  %v1534_v58 = vld [vmem:[#allocation7 + $0xa0] sm:$0xff]  ;;  %s1125_s23 = scalar_lea.sflag [#allocation4], %s2089_s17  ;;  %s1823_s24 = sshra.s32 %s1145_s21, 4  ;;  %s1824_s24 = int_to_ptr.hbm [resolvable:$true] %s1823_s24 }
  0x45   : > { %923 = vmatpush.bf16.msra.mxu3 %v1545_v56  ;;  %v1544_v59 = vld [vmem:[#allocation7 + $0xf0] sm:$0xff]  ;;  %v1517_v60 = vld [vmem:[#allocation7 + $0x18] sm:$0xff]  ;;  %v1543_v63 = vld [vmem:[#allocation7 + $0xe8] sm:$0xff]  ;;  %s1825_s26 = scalar_lea.hbm %s1824_s24, 8  ;;  %s1829_s1 = scalar_lea.hbm %s2360_s8, 16 }
  0x46   : > { %v1529_v61 = vld [vmem:[#allocation7 + $0x78] sm:$0xff]  ;;  %p1826_p1 = scmp.ne.s32.totalorder %s1824_s24, %s1825_s26  ;;  %p1830_p9 = scmp.lt.s32.totalorder %s1824_s24, %s2360_s8 }
  0x47   : > { %882 = vmatpush.bf16.msra.mxu0 %v1520_v52  ;;  %v1533_v62 = vld [vmem:[#allocation7 + $0x98] sm:$0xff]  ;;  %895 = vmatpush.bf16.msra.mxu1 %v1529_v61  ;;  %p1831_p10 = scmp.lt.s32.totalorder %s1829_s1, %s1825_s26 }
  0x48   : > { %573 = vadd.xlane.f32.xlu2 %v422_v3  ;;  %527 = vadd.xlane.f32.xlu0 %v421_v4  ;;  %p1827_p4 = pnand %p1826_p1, %p2061_p7 }
  0x49   : > { %433 = vadd.xlane.f32.xlu1 %v419_v5  ;;  %910 = vmatpush.bf16.msra.mxu2 %v1536_v53  ;;  %p1832_p2 = por %p1831_p10, %p1830_p9 }
  0x4a   : > { %924 = vmatpush.bf16.msra.mxu3 %v1544_v59  ;;  %p1828_p8 = pneg %p1827_p4 }
  0x4b   : > { %883 = vmatpush.bf16.msra.mxu0 %v1519_v54 }
  0x4c   : > { %p1833_p11 = pnand %p1832_p2, %p1828_p8 }
  0x4d   : > { %911 = vmatpush.bf16.msra.mxu2 %v1535_v55 }
  0x4e   : > { %925 = vmatpush.bf16.msra.mxu3 %v1543_v63 }
  0x4f   : > { %884 = vmatpush.bf16.msra.mxu0 %v1518_v57 }
  0x50   : > { %479 = vadd.xlane.f32.xlu0 %v416_v6 }
  0x51   : > { %481 = vadd.xlane.f32.xlu1 %v420_v7  ;;  %912 = vmatpush.bf16.msra.mxu2 %v1534_v58 }
  0x53   : > { %885 = vmatpush.bf16.msra.mxu0 %v1517_v60  ;;  %v1522_v60 = vld [vmem:[#allocation7 + $0x40] sm:$0xff] }
  0x55   : > { %913 = vmatpush.bf16.msra.mxu2 %v1533_v62 }
  0xb3   : > { %v572_v10 = vpop.xlane.xlu2 %571  ;;  %v526_v11 = vpop.xlane.xlu0 %525 }
  0xb4   : > { %v529_v12 = vmul.f32 0.03125, %v526_v11  ;;  %v432_v13 = vpop.xlane.xlu1 %431  ;;  %v575_v27 = vmul.f32 0.03125, %v572_v10  ;;  %v1541_v11 = vld [vmem:[#allocation7 + $0xd8] sm:$0xff] }
  0xb5   : > { %v435_v14 = vmul.f32 0.03125, %v432_v13 }
  0xb6   : > { %v531_v15 = vsub.f32 %v417_v1, %v529_v12  ;;  %v577_v36 = vsub.f32 %v418_v0, %v575_v27  ;;  %v1516_v0 = vld [vmem:[#allocation7 + $0x10] sm:$0xff]  ;;  %v1525_v27 = vld [vmem:[#allocation7 + $0x58] sm:$0xff] }
  0xb7   : > { %v437_v16 = vsub.f32 %v415_v2, %v435_v14  ;;  %v1528_v1 = vld [vmem:[#allocation7 + $0x70] sm:$0xff]  ;;  %886 = vmatpush.bf16.msra.mxu0 %v1516_v0 }
  0xb8   : > { %v2110_v17 = vsel %vm414_vm0, %v531_v15, 0.0  ;;  %v2140_v43 = vsel %vm414_vm0, %v577_v36, 0.0  ;;  %v1532_v2 = vld [vmem:[#allocation7 + $0x90] sm:$0xff]  ;;  %896 = vmatpush.bf16.msra.mxu1 %v1528_v1  ;;  %v1514_v15 = vld [vmem:[#allocation7] sm:$0xff] }
  0xb9   : > { %v535_v18 = vmul.f32 %v2110_v17, %v2110_v17  ;;  %v2116_v19 = vsel %vm414_vm0, %v437_v16, 0.0  ;;  %v581_v46 = vmul.f32 %v2140_v43, %v2140_v43  ;;  %914 = vmatpush.bf16.msra.mxu2 %v1532_v2  ;;  %v1526_v16 = vld [vmem:[#allocation7 + $0x60] sm:$0xff] }
  0xba   : > { %v443_v20 = vmul.f32 %v2116_v19, %v2116_v19 }
  0xbb   : > { %v574_v21 = vpop.xlane.xlu2 %573  ;;  %537 = vadd.xlane.f32.xlu2 %v535_v18  ;;  %v528_v22 = vpop.xlane.xlu0 %527  ;;  %v1530_v18 = vld [vmem:[#allocation7 + $0x80] sm:$0xff] }
  0xbc   : > { %v576_v23 = vmul.f32 0.03125, %v574_v21  ;;  %v530_v24 = vmul.f32 0.03125, %v528_v22  ;;  %445 = vadd.xlane.f32.xlu1 %v443_v20  ;;  %v434_v25 = vpop.xlane.xlu1 %433  ;;  %v1540_v20 = vld [vmem:[#allocation7 + $0xd0] sm:$0xff] }
  0xbd   : > { %v436_v26 = vmul.f32 0.03125, %v434_v25 }
  0xbe   : > { %v578_v28 = vsub.f32 %v422_v3, %v576_v23  ;;  %v532_v29 = vsub.f32 %v421_v4, %v530_v24  ;;  %v1542_v3 = vld [vmem:[#allocation7 + $0xe0] sm:$0xff] }
  0xbf   : > { %v438_v30 = vsub.f32 %v419_v5, %v436_v26  ;;  %926 = vmatpush.bf16.msra.mxu3 %v1542_v3  ;;  %v1515_v5 = vld [vmem:[#allocation7 + $0x8] sm:$0xff] }
  0xc0   : > { %v2122_v31 = vsel %vm414_vm0, %v532_v29, 0.0  ;;  %v2126_v32 = vsel %vm414_vm0, %v578_v28, 0.0  ;;  %887 = vmatpush.bf16.msra.mxu0 %v1515_v5  ;;  %v1539_v28 = vld [vmem:[#allocation7 + $0xc8] sm:$0xff] }
  0xc1   : > { %v536_v33 = vmul.f32 %v2122_v31, %v2122_v31  ;;  %v582_v34 = vmul.f32 %v2126_v32, %v2126_v32  ;;  %v2134_v35 = vsel %vm414_vm0, %v438_v30, 0.0 }
  0xc2   : > { %v444_v37 = vmul.f32 %v2134_v35, %v2134_v35 }
  0xc3   : > { %539 = vadd.xlane.f32.xlu0 %v536_v33  ;;  %v480_v38 = vpop.xlane.xlu0 %479  ;;  %927 = vmatpush.bf16.msra.mxu3 %v1541_v11 }
  0xc4   : > { %v483_v39 = vmul.f32 0.03125, %v480_v38  ;;  %585 = vadd.xlane.f32.xlu1 %v582_v34  ;;  %447 = vadd.xlane.f32.xlu2 %v444_v37  ;;  %v482_v40 = vpop.xlane.xlu1 %481  ;;  %v1524_v38 = vld [vmem:[#allocation7 + $0x50] sm:$0xff] }
  0xc5   : > { %v484_v41 = vmul.f32 0.03125, %v482_v40  ;;  %888 = vmatpush.bf16.msra.mxu0 %v1514_v15 }
  0xc6   : > { %v485_v42 = vsub.f32 %v416_v6, %v483_v39  ;;  %v1527_v6 = vld [vmem:[#allocation7 + $0x68] sm:$0xff]  ;;  %v1538_v39 = vld [vmem:[#allocation7 + $0xc0] sm:$0xff] }
  0xc7   : > { %v486_v45 = vsub.f32 %v420_v7, %v484_v41  ;;  %v1531_v7 = vld [vmem:[#allocation7 + $0x88] sm:$0xff]  ;;  %897 = vmatpush.bf16.msra.mxu1 %v1527_v6  ;;  %928 = vmatpush.bf16.msra.mxu3 %v1540_v20 }
  0xc8   : > { %v2144_v44 = vsel %vm414_vm0, %v485_v42, 0.0  ;;  %915 = vmatpush.bf16.msra.mxu2 %v1531_v7 }
  0xc9   : > { %v489_v47 = vmul.f32 %v2144_v44, %v2144_v44  ;;  %v2152_v48 = vsel %vm414_vm0, %v486_v45, 0.0 }
  0xca   : > { %v490_v49 = vmul.f32 %v2152_v48, %v2152_v48 }
  0xcb   : > { %583 = vadd.xlane.f32.xlu0 %v581_v46  ;;  %898 = vmatpush.bf16.msra.mxu1 %v1526_v16 }
  0xcc   : > { %491 = vadd.xlane.f32.xlu2 %v489_v47  ;;  %916 = vmatpush.bf16.msra.mxu2 %v1530_v18  ;;  %v1523_v47 = vld [vmem:[#allocation7 + $0x48] sm:$0xff] }
  0xcd   : > { %929 = vmatpush.bf16.msra.mxu3 %v1539_v28 }
  0xcf   : > { %899 = vmatpush.bf16.msra.mxu1 %v1525_v27  ;;  %v1664_v27 = vld [vmem:[#allocation5] ss:$0 sm:$0xff] }
  0xd1   : > { %930 = vmatpush.bf16.msra.mxu3 %v1538_v39 }
  0xd3   : > { %493 = vadd.xlane.f32.xlu0 %v490_v49  ;;  %900 = vmatpush.bf16.msra.mxu1 %v1524_v38 }
  0xd7   : > { %901 = vmatpush.bf16.msra.mxu1 %v1523_v47 }
  0xdb   : > { %902 = vmatpush.bf16.msra.mxu1 %v1522_v60 }
 0x12e   : > { %v538_v4 = vpop.xlane.xlu2 %537 }
 0x12f   : > { %v541_v8 = vmul.f32 0.03125, %v538_v4  ;;  %v446_v10 = vpop.xlane.xlu1 %445 }
 0x130   : > { %v449_v12 = vmul.f32 0.03125, %v446_v10 }
 0x131   : > { %v2156_v13 = vadd.f32 1e-05, %v541_v8 }
 0x132   : > { %v2158_v14 = vadd.f32 1e-05, %v449_v12 }
 0x133   : > { %1669 = vrsqrt.f32 %v2156_v13  ;;  %vm551_vm4 = vweird.f32 %v2156_v13 }
 0x134   : > { %1671 = vrsqrt.f32 %v2158_v14  ;;  %vm459_vm1 = vweird.f32 %v2158_v14 }
 0x136   : > { %v540_v21 = vpop.xlane.xlu0 %539 }
 0x137   : > { %v542_v22 = vmul.f32 0.03125, %v540_v21  ;;  %v448_v23 = vpop.xlane.xlu2 %447  ;;  %v586_v24 = vpop.xlane.xlu1 %585 }
 0x138   : > { %v450_v25 = vmul.f32 0.03125, %v448_v23  ;;  %v588_v26 = vmul.f32 0.03125, %v586_v24 }
 0x139   : > { %v2162_v29 = vpop.eup %1669  ;;  %v2164_v30 = vadd.f32 1e-05, %v542_v22 }
 0x13a   : > { %v2166_v33 = vpop.eup %1671  ;;  %v546_v34 = vmul.f32 %v2162_v29, %v2156_v13  ;;  %v2170_v36 = vadd.f32 1e-05, %v450_v25  ;;  %v2172_v37 = vadd.f32 1e-05, %v588_v26  ;;  %vm552_vm2 = vweird.f32 %v2162_v29 }
 0x13b   : > { %v454_v40 = vmul.f32 %v2166_v33, %v2158_v14  ;;  %1673 = vrsqrt.f32 %v2164_v30  ;;  %vm460_vm3 = vweird.f32 %v2166_v33  ;;  %vm2203_vm5 = vmor %vm551_vm4, %vm552_vm2  ;;  %vm561_vm6 = vweird.f32 %v2164_v30 }
 0x13c   : > { %v547_v41 = vmul.f32 %v2162_v29, %v546_v34  ;;  %1675 = vrsqrt.f32 %v2170_v36  ;;  %vm469_vm7 = vweird.f32 %v2170_v36  ;;  %vm2214_vm8 = vmor %vm459_vm1, %vm460_vm3  ;;  %vm607_vm11 = vweird.f32 %v2172_v37 }
 0x13d   : > { %v455_v42 = vmul.f32 %v2166_v33, %v454_v40  ;;  %1677 = vrsqrt.f32 %v2172_v37 }
 0x13e   : > { %v548_v45 = vmul.f32 0.5, %v547_v41  ;;  %v584_v46 = vpop.xlane.xlu0 %583 }
 0x13f   : > { %v456_v49 = vmul.f32 0.5, %v455_v42  ;;  %v587_v50 = vmul.f32 0.03125, %v584_v46  ;;  %v492_v51 = vpop.xlane.xlu2 %491 }
 0x140   : > { %v549_v52 = vsub.f32 1.5, %v548_v45  ;;  %v495_v53 = vmul.f32 0.03125, %v492_v51 }
 0x141   : > { %v2181_v54 = vpop.eup %1673  ;;  %v457_v55 = vsub.f32 1.5, %v456_v49  ;;  %v2183_v56 = vadd.f32 1e-05, %v587_v50 }
 0x142   : > { %v1676_v57 = vpop.eup %1675  ;;  %v556_v58 = vmul.f32 %v2181_v54, %v2164_v30  ;;  %v2188_v59 = vadd.f32 1e-05, %v495_v53  ;;  %v550_v63 = vmul.f32 %v2162_v29, %v549_v52  ;;  %vm562_vm9 = vweird.f32 %v2181_v54 }
 0x143   : > { %v2190_v61 = vpop.eup %1677  ;;  %v464_v62 = vmul.f32 %v1676_v57, %v2170_v36  ;;  %1679 = vrsqrt.f32 %v2183_v56  ;;  %v458_v0 = vmul.f32 %v2166_v33, %v457_v55  ;;  %vm470_vm10 = vweird.f32 %v1676_v57  ;;  %vm2232_vm13 = vmor %vm561_vm6, %vm562_vm9 }
 0x144   : > { %v557_v1 = vmul.f32 %v2181_v54, %v556_v58  ;;  %v602_v2 = vmul.f32 %v2190_v61, %v2172_v37  ;;  %1681 = vrsqrt.f32 %v2188_v59  ;;  %v554_v16 = vsel %vm2203_vm5, %v2162_v29, %v550_v63  ;;  %vm471_vm14 = vmor %vm469_vm7, %vm470_vm10  ;;  %v1665_v37 = vld [vmem:[%s2354_s2] ss:$0 sm:$0xff] }
 0x145   : > { %v465_v3 = vmul.f32 %v1676_v57, %v464_v62  ;;  %v462_v15 = vsel %vm2214_vm8, %v2166_v33, %v458_v0  ;;  %vm608_vm12 = vweird.f32 %v2190_v61  ;;  %v565_v29 = vmul.f32 %v554_v16, %v2110_v17 }
 0x146   : > { %v558_v5 = vmul.f32 0.5, %v557_v1  ;;  %v603_v6 = vmul.f32 %v2190_v61, %v602_v2  ;;  %v494_v7 = vpop.xlane.xlu0 %493  ;;  %v473_v28 = vmul.f32 %v462_v15, %v2116_v19  ;;  %vm2246_vm15 = vmor %vm607_vm11, %vm608_vm12  ;;  %vm597_vm2 = vweird.f32 %v2183_v56 }
 0x147   : > { %v466_v10 = vmul.f32 0.5, %v465_v3  ;;  %v496_v11 = vmul.f32 0.03125, %v494_v7  ;;  %v567_v45 = vmul.f32 %v1664_v27, %v565_v29  ;;  %vm505_vm3 = vweird.f32 %v2188_v59 }
 0x148   : > { %v559_v12 = vsub.f32 1.5, %v558_v5  ;;  %v604_v13 = vmul.f32 0.5, %v603_v6  ;;  %v475_v42 = vmul.f32 %v1664_v27, %v473_v28 }
 0x149   : > { %v1680_v14 = vpop.eup %1679  ;;  %v467_v18 = vsub.f32 1.5, %v466_v10  ;;  %v2227_v20 = vadd.f32 1e-05, %v496_v11  ;;  %v569_v58 = vadd.f32 %v1665_v37, %v567_v45 }
 0x14a   : > { %v560_v21 = vmul.f32 %v2181_v54, %v559_v12  ;;  %v605_v23 = vsub.f32 1.5, %v604_v13  ;;  %v592_v24 = vmul.f32 %v1680_v14, %v2183_v56  ;;  %v1682_v25 = vpop.eup %1681  ;;  %vm598_vm1 = vweird.f32 %v1680_v14 }
 0x14b   : > { %v468_v26 = vmul.f32 %v1676_v57, %v467_v18  ;;  %1683 = vrsqrt.f32 %v2227_v20  ;;  %v500_v38 = vmul.f32 %v1682_v25, %v2188_v59  ;;  %vm506_vm4 = vweird.f32 %v1682_v25  ;;  %vm599_vm5 = vmor %vm597_vm2, %vm598_vm1 }
 0x14c   : > { %v606_v30 = vmul.f32 %v2190_v61, %v605_v23  ;;  %v593_v34 = vmul.f32 %v1680_v14, %v592_v24  ;;  %v564_v39 = vsel %vm2232_vm13, %v2181_v54, %v560_v21  ;;  %v477_v55 = vadd.f32 %v1665_v37, %v475_v42  ;;  %vm507_vm6 = vmor %vm505_vm3, %vm506_vm4 }
 0x14d   : > { %v472_v36 = vsel %vm471_vm14, %v1676_v57, %v468_v26  ;;  %v501_v19 = vmul.f32 %v1682_v25, %v500_v38  ;;  %v566_v41 = vmul.f32 %v564_v39, %v2122_v31  ;;  %vm515_vm8 = vweird.f32 %v2227_v20 }
 0x14e   : > { %v594_v40 = vmul.f32 0.5, %v593_v34  ;;  %v474_v17 = vmul.f32 %v472_v36, %v2134_v35  ;;  %v610_v46 = vsel %vm2246_vm15, %v2190_v61, %v606_v30 }
 0x14f   : > { %v502_v49 = vmul.f32 0.5, %v501_v19  ;;  %v568_v51 = vmul.f32 %v1664_v27, %v566_v41  ;;  %v612_v31 = vmul.f32 %v610_v46, %v2126_v32 }
 0x150   : > { %v595_v47 = vsub.f32 1.5, %v594_v40  ;;  %v476_v50 = vmul.f32 %v1664_v27, %v474_v17 }
 0x151   : > { %v1684_v52 = vpop.eup %1683  ;;  %v503_v53 = vsub.f32 1.5, %v502_v49  ;;  %v570_v60 = vadd.f32 %v1665_v37, %v568_v51  ;;  %v614_v32 = vmul.f32 %v1664_v27, %v612_v31  ;;  %v1561_v49 = vld [vmem:[#allocation8 + $0x74] sm:$0xf0] }
 0x152   : > { %v596_v35 = vmul.f32 %v1680_v14, %v595_v47  ;;  %v510_v54 = vmul.f32 %v1684_v52, %v2227_v20  ;;  %v478_v57 = vadd.f32 %v1665_v37, %v476_v50  ;;  %vm516_vm7 = vweird.f32 %v1684_v52  ;;  %v1499_v47 = vld [vmem:[#allocation8 + $0x70] sm:$0xf]  ;;  %v1560_v50 = vld [vmem:[#allocation8 + $0x74] sm:$0xf] }
 0x153   : > { %v504_v61 = vmul.f32 %v1682_v25, %v503_v53  ;;  %v619_v0 = vpack.c.bf16 %v570_v60, %v569_v58  ;;  %v616_v6 = vadd.f32 %v1665_v37, %v614_v32  ;;  %vm517_vm9 = vmor %vm515_vm8, %vm516_vm7  ;;  %v1500_v51 = vor.u32 %v1561_v49, %v1499_v47  ;;  %v1559_v53 = vld [vmem:[#allocation8 + $0x64] sm:$0xf0]  ;;  %v1483_v58 = vld [vmem:[#allocation8 + $0x50] sm:$0xf] }
 0x154   : > { %v511_v62 = vmul.f32 %v1684_v52, %v510_v54  ;;  %v600_v63 = vsel %vm599_vm5, %v1680_v14, %v596_v35  ;;  %v617_v56 = vpack.c.bf16 %v478_v57, %v477_v55  ;;  %v1491_v35 = vld [vmem:[#allocation8 + $0x60] sm:$0xf]  ;;  %v1558_v54 = vld [vmem:[#allocation8 + $0x64] sm:$0xf]  ;;  %v1493_v57 = vld [vmem:[#allocation8 + $0x68] sm:$0xf0] }
 0x155   : > { %v611_v59 = vmul.f32 %v600_v63, %v2140_v43  ;;  %v508_v2 = vsel %vm507_vm6, %v1682_v25, %v504_v61  ;;  %917 = vmatmul.bf16.vlgmr.msra.gmra.mxu2 %v619_v0  ;;  %1088 = vmatpush.bf16.msrb.mxu0 %v1500_v51  ;;  %v1492_v55 = vor.u32 %v1559_v53, %v1491_v35  ;;  %v1557_v60 = vld [vmem:[#allocation8 + $0x54] sm:$0xf0]  ;;  %v1556_v61 = vld [vmem:[#allocation8 + $0x54] sm:$0xf]  ;;  %v1485_v63 = vld [vmem:[#allocation8 + $0x58] sm:$0xf0] }
 0x156   : > { %v512_v1 = vmul.f32 0.5, %v511_v62  ;;  %889 = vmatmul.bf16.vlgmr.msra.gmra.mxu0 %v617_v56  ;;  %v519_v7 = vmul.f32 %v508_v2, %v2144_v44  ;;  %v1666_v44 = vld [vmem:[%s2356_s4] ss:$0 sm:$0xff]  ;;  %v1496_v9 = vor.u32 %v1558_v54, %v1493_v57  ;;  %v1484_v62 = vor.u32 %v1557_v60, %v1483_v58  ;;  %v1475_v0 = vld [vmem:[#allocation8 + $0x40] sm:$0xf] }
 0x157   : > { %v613_v3 = vmul.f32 %v1664_v27, %v611_v59  ;;  %v1488_v56 = vor.u32 %v1556_v61, %v1485_v63  ;;  %v1555_v59 = vld [vmem:[#allocation8 + $0x44] sm:$0xf0]  ;;  %v1554_v32 = vld [vmem:[#allocation8 + $0x44] sm:$0xf]  ;;  %v1477_v2 = vld [vmem:[#allocation8 + $0x48] sm:$0xf0] }
 0x158   : > { %v513_v4 = vsub.f32 1.5, %v512_v1  ;;  %v521_v12 = vmul.f32 %v1664_v27, %v519_v7  ;;  %v1476_v1 = vor.u32 %v1555_v59, %v1475_v0  ;;  %v1668_v57 = vld [vmem:[%s2358_s6] ss:$0 sm:$0xff] }
 0x159   : > { %v615_v5 = vadd.f32 %v1665_v37, %v613_v3  ;;  %1089 = vmatpush.bf16.msrb.mxu0 %v1492_v55  ;;  %v1480_v3 = vor.u32 %v1554_v32, %v1477_v2 }
 0x15a   : > { %v514_v8 = vmul.f32 %v1684_v52, %v513_v4  ;;  %v523_v15 = vadd.f32 %v1665_v37, %v521_v12  ;;  %v1467_v4 = vld [vmem:[#allocation8 + $0x30] sm:$0xf]  ;;  %v1550_v12 = vld [vmem:[#allocation8 + $0x24] sm:$0xf] }
 0x15b   : > { %v620_v10 = vpack.c.bf16 %v616_v6, %v615_v5  ;;  %v1553_v5 = vld [vmem:[#allocation8 + $0x34] sm:$0xf0]  ;;  %v1552_v6 = vld [vmem:[#allocation8 + $0x34] sm:$0xf] }
 0x15c   : > { %v518_v11 = vsel %vm517_vm9, %v1684_v52, %v514_v8  ;;  %v1501_v52 = vld [vmem:[#allocation8 + $0x78] sm:$0xf0]  ;;  %v1468_v7 = vor.u32 %v1553_v5, %v1467_v4 }
 0x15d   : > { %931 = vmatmul.bf16.vlgmr.msra.gmra.mxu3 %v620_v10  ;;  %v520_v43 = vmul.f32 %v518_v11, %v2152_v48  ;;  %v1504_v31 = vor.u32 %v1560_v50, %v1501_v52  ;;  %1090 = vmatpush.bf16.msrb.mxu0 %v1484_v62  ;;  %v1469_v8 = vld [vmem:[#allocation8 + $0x38] sm:$0xf0]  ;;  %v1459_v11 = vld [vmem:[#allocation8 + $0x20] sm:$0xf] }
 0x15e   : > { %v1472_v10 = vor.u32 %v1552_v6, %v1469_v8 }
 0x15f   : > { %v522_v13 = vmul.f32 %v1664_v27, %v520_v43  ;;  %1102 = vmatpush.bf16.msrb.mxu1 %v1504_v31  ;;  %v1551_v43 = vld [vmem:[#allocation8 + $0x24] sm:$0xf0]  ;;  %v1667_v31 = vld [vmem:[%s2357_s5] ss:$0 sm:$0xff] }
 0x161   : > { %v524_v16 = vadd.f32 %v1665_v37, %v522_v13  ;;  %1091 = vmatpush.bf16.msrb.mxu0 %v1476_v1  ;;  %v1460_v13 = vor.u32 %v1551_v43, %v1459_v11 }
 0x163   : > { %v618_v14 = vpack.c.bf16 %v524_v16, %v523_v15  ;;  %1103 = vmatpush.bf16.msrb.mxu1 %v1496_v9  ;;  %v1461_v15 = vld [vmem:[#allocation8 + $0x28] sm:$0xf0] }
 0x164   : > { %v1464_v16 = vor.u32 %v1550_v12, %v1461_v15 }
 0x165   : > { %903 = vmatmul.bf16.vlgmr.msra.gmra.mxu1 %v618_v14  ;;  %1092 = vmatpush.bf16.msrb.mxu0 %v1468_v7  ;;  %v1451_v14 = vld [vmem:[#allocation8 + $0x10] sm:$0xf] }
 0x167   : > { %1104 = vmatpush.bf16.msrb.mxu1 %v1488_v56 }
 0x169   : > { %1093 = vmatpush.bf16.msrb.mxu0 %v1460_v13 }
 0x16b   : > { %1105 = vmatpush.bf16.msrb.mxu1 %v1480_v3 }
 0x16f   : > { %1106 = vmatpush.bf16.msrb.mxu1 %v1472_v10 }
 0x173   : > { %1107 = vmatpush.bf16.msrb.mxu1 %v1464_v16 }
 0x1d3   : > { %v890_v18 = vpop.f32.mrf.mxu0 }
 0x1d4   : > { %v891_v21 = vadd.f32 %v1666_v44, %v890_v18  ;;  %v1549_v18 = vld [vmem:[#allocation8 + $0x14] sm:$0xf0] }
 0x1d8   : > { %v918_v22 = vpop.f32.mrf.mxu2 }
 0x1db   : > { %v892_v26 = vpop.f32.mrf.mxu0 }
 0x1dc   : > { %v893_v48 = vadd.f32 %v1666_v44, %v892_v26  ;;  %v1548_v44 = vld [vmem:[#allocation8 + $0x14] sm:$0xf]  ;;  %v1547_v26 = vld [vmem:[#allocation8 + $0x4] sm:$0xf0] }
 0x1e0   : > { %v932_v24 = vpop.f32.mrf.mxu3  ;;  %v920_v30 = vpop.f32.mrf.mxu2 }
 0x1e2   : > { %v904_v20 = vpop.f32.mrf.mxu1 }
 0x1e3   : > { %v905_v23 = vadd.f32 %v904_v20, %v891_v21  ;;  %v1453_v20 = vld [vmem:[#allocation8 + $0x18] sm:$0xf0] }
 0x1e5   : > { %v919_v25 = vadd.f32 %v918_v22, %v905_v23  ;;  %v1452_v22 = vor.u32 %v1549_v18, %v1451_v14 }
 0x1e7   : > { %v933_v28 = vadd.f32 %v932_v24, %v919_v25  ;;  %v1456_v24 = vor.u32 %v1548_v44, %v1453_v20  ;;  %v1443_v25 = vld [vmem:[#allocation8] sm:$0xf]  ;;  %1094 = vmatpush.bf16.msrb.mxu0 %v1452_v22 }
 0x1e8   : > { %v934_v34 = vpop.f32.mrf.mxu3 }
 0x1e9   : > { %939 = vadd.xlane.f32.xlu1 %v933_v28  ;;  %1108 = vmatpush.bf16.msrb.mxu1 %v1456_v24 }
 0x1ea   : > { %v906_v27 = vpop.f32.mrf.mxu1 }
 0x1eb   : > { %v907_v29 = vadd.f32 %v906_v27, %v893_v48  ;;  %v1445_v48 = vld [vmem:[#allocation8 + $0x8] sm:$0xf0] }
 0x1ed   : > { %v921_v33 = vadd.f32 %v920_v30, %v907_v29  ;;  %v1444_v29 = vor.u32 %v1547_v26, %v1443_v25 }
 0x1ef   : > { %v935_v38 = vadd.f32 %v934_v34, %v921_v33  ;;  %1095 = vmatpush.bf16.msrb.mxu0 %v1444_v29 }
 0x1f1   : > { %941 = vadd.xlane.f32.xlu2 %v935_v38 }
 0x25c   : > { %v940_v36 = vpop.xlane.xlu1 %939 }
 0x25d   : > { %v943_v39 = vmul.f32 0.03125, %v940_v36 }
 0x25f   : > { %v945_v40 = vsub.f32 %v933_v28, %v943_v39  ;;  %v1546_v28 = vld [vmem:[#allocation8 + $0x4] sm:$0xf] }
 0x260   : > { %v1448_v30 = vor.u32 %v1546_v28, %v1445_v48 }
 0x261   : > { %v2276_v19 = vsel %vm414_vm0, %v945_v40, 0.0 }
 0x262   : > { %v949_v17 = vmul.f32 %v2276_v19, %v2276_v19  ;;  %1109 = vmatpush.bf16.msrb.mxu1 %v1448_v30 }
 0x264   : > { %v942_v41 = vpop.xlane.xlu2 %941  ;;  %951 = vadd.xlane.f32.xlu0 %v949_v17 }
 0x265   : > { %v944_v37 = vmul.f32 0.03125, %v942_v41 }
 0x267   : > { %v946_v42 = vsub.f32 %v935_v38, %v944_v37 }
 0x269   : > { %v2282_v45 = vsel %vm414_vm0, %v946_v42, 0.0 }
 0x26a   : > { %v950_v46 = vmul.f32 %v2282_v45, %v2282_v45 }
 0x26c   : > { %953 = vadd.xlane.f32.xlu1 %v950_v46 }
 0x2d7   : > { %v952_v21 = vpop.xlane.xlu0 %951 }
 0x2d8   : > { %v955_v23 = vmul.f32 0.03125, %v952_v21 }
 0x2da   : > { %v957_v27 = vadd.f32 1e-05, %v955_v23 }
 0x2dc   : > { %1685 = vrsqrt.f32 %v957_v27  ;;  %vm965_vm10 = vweird.f32 %v957_v27 }
 0x2df   : > { %v954_v33 = vpop.xlane.xlu1 %953 }
 0x2e0   : > { %v956_v34 = vmul.f32 0.03125, %v954_v33 }
 0x2e2   : > { %v1686_v38 = vpop.eup %1685  ;;  %v958_v36 = vadd.f32 1e-05, %v956_v34 }
 0x2e3   : > { %v960_v39 = vmul.f32 %v1686_v38, %v957_v27  ;;  %vm966_vm0 = vweird.f32 %v1686_v38 }
 0x2e4   : > { %1687 = vrsqrt.f32 %v958_v36  ;;  %vm967_vm11 = vmor %vm965_vm10, %vm966_vm0  ;;  %vm975_vm13 = vweird.f32 %v958_v36 }
 0x2e5   : > { %v961_v40 = vmul.f32 %v1686_v38, %v960_v39 }
 0x2e7   : > { %v962_v17 = vmul.f32 0.5, %v961_v40 }
 0x2e9   : > { %v963_v41 = vsub.f32 1.5, %v962_v17 }
 0x2ea   : > { %v1688_v37 = vpop.eup %1687 }
 0x2eb   : > { %v964_v42 = vmul.f32 %v1686_v38, %v963_v41  ;;  %v970_v46 = vmul.f32 %v1688_v37, %v958_v36  ;;  %vm976_vm12 = vweird.f32 %v1688_v37 }
 0x2ec   : > { %vm977_vm14 = vmor %vm975_vm13, %vm976_vm12 }
 0x2ed   : > { %v971_v47 = vmul.f32 %v1688_v37, %v970_v46  ;;  %v968_v49 = vsel %vm967_vm11, %v1686_v38, %v964_v42 }
 0x2ee   : > { %v979_v52 = vmul.f32 %v968_v49, %v2276_v19 }
 0x2ef   : > { %v972_v50 = vmul.f32 0.5, %v971_v47 }
 0x2f0   : > { %v984_v55 = vmul.f32 %v1667_v31, %v979_v52 }
 0x2f1   : > { %v973_v51 = vsub.f32 1.5, %v972_v50 }
 0x2f2   : > { %v989_v58 = vadd.f32 %v1668_v57, %v984_v55 }
 0x2f3   : > { %v974_v35 = vmul.f32 %v1688_v37, %v973_v51 }
 0x2f5   : > { %v978_v53 = vsel %vm977_vm14, %v1688_v37, %v974_v35 }
 0x2f6   : > { %v980_v54 = vmul.f32 %v978_v53, %v2282_v45 }
 0x2f8   : > { %v985_v9 = vmul.f32 %v1667_v31, %v980_v54 }
 0x2fa   : > { %v990_v60 = vadd.f32 %v1668_v57, %v985_v9 }
 0x2fc   : > { %v991_v19 = vpack.c.bf16 %v990_v60, %v989_v58 }
 0x2fe   : > { %1096 = vmatmul.bf16.vlgmr.msrb.gmra.mxu0 %v991_v19  ;;  %1110 = vmatmul.bf16.vlgmr.msrb.gmra.mxu1 %v991_v19 }
 0x37b   : > { %v1097_v61 = vpop.f32.mrf.mxu0  ;;  %v1111_v62 = vpop.f32.mrf.mxu1 }
 0x383   : > { %v1099_v45 = vpop.f32.mrf.mxu0  ;;  %v1113_v63 = vpop.f32.mrf.mxu1 }
 0x384   : > { %v1567_v56 = vpack.c.bf16 %v1099_v45, %v1097_v61  ;;  %v1572_v0 = vpack.c.bf16 %v1113_v63, %v1111_v62 }
 0x386   : > { %1568 = vst [vmem:[%s404_s22] sm:$0xff] %v1567_v56  }
 0x387   : > { %1573 = vst [vmem:[%s411_s15] sm:$0xff] %v1572_v0  }
 0x388   : > { %1836 = shalt.err (!%p1833_p11)
}
 0x389   : > { %s1926_s22 = smov 64   ;;  %s1927_s15 = smov 4  }
 0x38a   : > { %1588 = dma.vmem_to_hbm [thread:$0]  (%p2061_p7), %s2302_s18, 128, %s1145_s21, %s1125_s23, %s1926_s22, %s1926_s22, %s1927_s15  }
 0x38b   : > { %s1130_s28 = scalar_lea.sflag [#allocation12], %s2089_s17  ;;  %s1851_s3 = sshra.s32 %s2306_s13, 4  ;;  %s1852_s3 = int_to_ptr.hbm [resolvable:$true] %s1851_s3 }
 0x38c   : > { %s1853_s7 = scalar_lea.hbm %s1852_s3, 8  ;;  %s1857_s1 = scalar_lea.hbm %s2361_s9, 16 }
 0x38d   : > { %p1854_p12 = scmp.ne.s32.totalorder %s1852_s3, %s1853_s7  ;;  %p1858_p3 = scmp.lt.s32.totalorder %s1852_s3, %s2361_s9 }
 0x38e   : > { %p1859_p5 = scmp.lt.s32.totalorder %s1857_s1, %s1853_s7 }
 0x38f   : > { %p1855_p13 = pnand %p1854_p12, %p2061_p7 }
 0x390   : > { %p1860_p1 = por %p1859_p5, %p1858_p3 }
 0x391   : > { %p1856_p0 = pneg %p1855_p13 }
 0x393   : > { %p1861_p4 = pnand %p1860_p1, %p1856_p0 }
 0x395   : > { %1864 = shalt.err (!%p1861_p4)
}
 0x396   : > { %1589 = dma.vmem_to_hbm [thread:$0]  (%p2061_p7), %s2304_s20, 128, %s2306_s13, %s1130_s28, %s1926_s22, %s1926_s22, %s1927_s15  }
 0x397 PF: > { %s1176_s17 = sand.u32 1, %s1903_s30   ;;  %p2382_p8 = scmp.ge.s32.totalorder %s1915_s12, 2 }
 0x398   : > { %s1177_s18 = scalar_lea.sflag [#allocation4], %s1176_s17 }
 0x399   : > { %p1607_p9 = pnand %p2382_p8, %p2013_p6 }
 0x39b   : > { %p1608_p10 = pneg %p1607_p9 }
 0x39d   : > { %1894 = dma.done.wait (%p1608_p10), %s1177_s18, 128  }
 0x39e   : > { %1896 = vsyncadd (%p1608_p10), %s1177_s18, 4294967168  ;;  %s1187_s21 = scalar_lea.sflag [#allocation12], %s1176_s17 }
 0x39f   : > { %1898 = dma.done.wait (%p1608_p10), %s1187_s21, 128  }
 0x3a0   : > { %1900 = vsyncadd (%p1608_p10), %s1187_s21, 4294967168  ;;  %p28_p7 = scmp.ge.s32.totalorder %s2047_s27, 4   ;;  %s2383_s30 = smov %s1907_s10 }
 0x3a1   : > { %s2384_s10 = smov %s1911_s11  ;;  %s2385_s11 = smov %s2057_s29 }
 0x3a2   : > { %s2386_s12 = smov %s2047_s27  ;;  %30 = sbr.rel (!%p28_p7) target bundleno = 13 (0xd), region = 126 }
 0x3a7   :  { %1193 = vsyncpa [#allocation3], 1 }
 0x3a8   :  { %1195 = vsyncpa [#allocation3 + $0x1], 1 }
 0x3a9   :  { %1196 = vsyncpa [#allocation6], 1 }
 0x3aa   :  { %1197 = vsyncpa [#allocation9], 1 }
 0x3ab   :  { %1198 = vsyncpa [#allocation4], 1 }
 0x3ac   :  { %1200 = vsyncpa [#allocation4 + $0x1], 1 }
 0x3ad   :  { %1201 = vsyncpa [#allocation12], 1 }
 0x3ae   :  { %1203 = vsyncpa [#allocation12 + $0x1], 1 }

</bundles_post_ra>
